<compile_context>
chip_gen: v6e
topology: v6e:2x2x1
jax: 0.10.0
libtpu: 0.0.40
codegen_flags: <defaults>
</compile_context>

<pallas_src>
import functools

import jax
import jax.numpy as jnp
from jax.experimental import pallas as pl
from jax.experimental.pallas import tpu as pltpu


_LANE = 128
_SUBLANE = 8


def _round_up(x, m):
    return ((x + m - 1) // m) * m


def _fused_mlp_kernel(x_ref, w1_ref, b1_ref, w2_ref, b2_ref, o_ref):
    # First linear + bias + ReLU.  MXU accumulates in f32; epilogue stays f32
    # (safe on v5e: no bf16 VALU there).
    h = jnp.dot(x_ref[...], w1_ref[...], preferred_element_type=jnp.float32)
    h = jnp.maximum(h + b1_ref[...], 0.0)
    # Dropout(0.5): eval-mode identity.
    # TODO(synk): training-mode dropout would use pltpu.prng_seed + stateful_bernoulli.
    out = jnp.dot(h.astype(w2_ref.dtype), w2_ref[...],
                  preferred_element_type=jnp.float32)
    o_ref[...] = (out + b2_ref[...]).astype(o_ref.dtype)


def _fuse_head_params(heads):
    """Concatenate per-head (w1, b1, w2, b2) into one wide MLP with block-diag W2."""
    d_in = heads[0][0].shape[0]
    for (w1_h, _, _, _) in heads:
        assert w1_h.shape[0] == d_in, "all heads must share the same input dim"
    d_inner_tot = sum(h[0].shape[1] for h in heads)
    d_out_tot = sum(h[2].shape[1] for h in heads)

    w1 = jnp.concatenate([h[0] for h in heads], axis=1)      # (d_in, d_inner_tot)
    b1 = jnp.concatenate([h[1] for h in heads], axis=0)      # (d_inner_tot,)
    b2 = jnp.concatenate([h[3] for h in heads], axis=0)      # (d_out_tot,)

    # Block-diagonal W2 so each head's hidden only feeds its own outputs.
    w2 = jnp.zeros((d_inner_tot, d_out_tot), dtype=heads[0][2].dtype)
    r0 = c0 = 0
    out_slices = []
    for (_, _, w2_h, _) in heads:
        r, c = w2_h.shape
        w2 = w2.at[r0:r0 + r, c0:c0 + c].set(w2_h)
        out_slices.append((c0, c))
        r0 += r
        c0 += c
    return w1, b1, w2, b2, out_slices


def multi_linear_fused(x, heads, *, row_tile=256, compute_dtype=None):
    """Fused eval-mode forward of several MultiLinear heads sharing the same input.

    x     : [..., d_in]
    heads : sequence of (w1 [d_in, d_inner], b1 [d_inner], w2 [d_inner, d_out], b2 [d_out])
            (weights stored transposed relative to nn.Linear, i.e. x @ W layout)
    Returns one array [..., d_out_i] per head.
    """
    if compute_dtype is None:
        compute_dtype = x.dtype
    assert row_tile % _SUBLANE == 0, "row_tile must be a multiple of 8 (f32 sublane)"

    d_in = x.shape[-1]
    lead_shape = x.shape[:-1]
    out_dtype = x.dtype

    w1, b1, w2, b2, out_slices = _fuse_head_params(heads)
    d_inner = w1.shape[1]
    d_out = w2.shape[1]

    # Pad every matmul dim to lane width (128): full MXU tiles + lane-dense stores.
    d_in_p = _round_up(d_in, _LANE)
    d_inner_p = _round_up(d_inner, _LANE)
    d_out_p = _round_up(d_out, _LANE)

    x2d = x.reshape(-1, d_in)
    n_rows = x2d.shape[0]
    n_rows_p = _round_up(max(n_rows, 1), row_tile)
    grid_m = n_rows_p // row_tile

    x2d = jnp.pad(x2d, ((0, n_rows_p - n_rows), (0, d_in_p - d_in)))
    w1 = jnp.pad(w1, ((0, d_in_p - d_in), (0, d_inner_p - d_inner)))
    b1 = jnp.pad(b1, (0, d_inner_p - d_inner)).reshape(1, d_inner_p)
    w2 = jnp.pad(w2, ((0, d_inner_p - d_inner), (0, d_out_p - d_out)))
    b2 = jnp.pad(b2, (0, d_out_p - d_out)).reshape(1, d_out_p)

    # bf16 operands (f32 accumulation) halve the x/w DMA bytes and hit the fast
    # MXU path on v6e/v7x; biases and the epilogue stay in f32.
    x2d = x2d.astype(compute_dtype)
    w1 = w1.astype(compute_dtype)
    w2 = w2.astype(compute_dtype)
    b1 = b1.astype(jnp.float32)
    b2 = b2.astype(jnp.float32)

    cost = pl.CostEstimate(
        flops=2 * n_rows_p * (d_in_p * d_inner_p + d_inner_p * d_out_p),
        transcendentals=0,
        bytes_accessed=(x2d.size * x2d.dtype.itemsize
                        + w1.size * w1.dtype.itemsize
                        + w2.size * w2.dtype.itemsize
                        + (b1.size + b2.size) * 4
                        + n_rows_p * d_out_p * jnp.dtype(out_dtype).itemsize),
    )

    out2d = pl.pallas_call(
        _fused_mlp_kernel,
        out_shape=jax.ShapeDtypeStruct((n_rows_p, d_out_p), out_dtype),
        grid_spec=pltpu.PrefetchScalarGridSpec(
            num_scalar_prefetch=0,
            grid=(grid_m,),
            in_specs=[
                pl.BlockSpec((row_tile, d_in_p), lambda i: (i, 0)),     # x rows (pipelined)
                pl.BlockSpec((d_in_p, d_inner_p), lambda i: (0, 0)),    # w1 (resident)
                pl.BlockSpec((1, d_inner_p), lambda i: (0, 0)),         # b1 (resident)
                pl.BlockSpec((d_inner_p, d_out_p), lambda i: (0, 0)),   # w2 (resident)
                pl.BlockSpec((1, d_out_p), lambda i: (0, 0)),           # b2 (resident)
            ],
            out_specs=pl.BlockSpec((row_tile, d_out_p), lambda i: (i, 0)),
        ),
        compiler_params=pltpu.CompilerParams(
            dimension_semantics=("parallel",)),   # row grid shards across TCs on v7x
        cost_estimate=cost,
    )(x2d, w1, b1, w2, b2)

    out2d = out2d[:n_rows]
    return [out2d[:, c0:c0 + c].reshape(*lead_shape, c) for (c0, c) in out_slices]


def phoneme_split_heads(x, frame_head, bound_head, *, row_tile=256, compute_dtype=None):
    """x_out = frame_linear(x); bound_out = bound_linear(x).squeeze(-1)  (eval mode)."""
    frame_out, bound_out = multi_linear_fused(
        x, (frame_head, bound_head), row_tile=row_tile, compute_dtype=compute_dtype)
    return frame_out, bound_out[..., 0]


def init_multi_linear_params(key, d_in, d_out, d_inner, dtype=jnp.float32):
    """Deterministic init mirroring nn.Linear's default (uniform +/- 1/sqrt(fan_in))."""
    k1, k2, k3, k4 = jax.random.split(key, 4)
    bound1 = 1.0 / (d_in ** 0.5)
    bound2 = 1.0 / (d_inner ** 0.5)
    w1 = jax.random.uniform(k1, (d_in, d_inner), dtype, -bound1, bound1)
    b1 = jax.random.uniform(k2, (d_inner,), dtype, -bound1, bound1)
    w2 = jax.random.uniform(k3, (d_inner, d_out), dtype, -bound2, bound2)
    b2 = jax.random.uniform(k4, (d_out,), dtype, -bound2, bound2)
    return w1, b1, w2, b2


if __name__ == "__main__":
    key = jax.random.PRNGKey(0)
    kx, kf, kb = jax.random.split(key, 3)

    # Shapes consistent with the module's output heads:
    #   x: encoder activations [batch, frames, embed_dim]
    #   frame_linear = MultiLinear(embed_dim, num_class, 128)
    #   bound_linear = MultiLinear(embed_dim, 1, 128)
    batch, frames = 2, 200
    embed_dim, num_class, d_inner = 256, 41, 128

    x = jax.random.normal(kx, (batch, frames, embed_dim), dtype=jnp.float32)
    frame_head = init_multi_linear_params(kf, embed_dim, num_class, d_inner)
    bound_head = init_multi_linear_params(kb, embed_dim, 1, d_inner)

    # f32 path (exact check against the pure-JAX reference).
    run = jax.jit(functools.partial(phoneme_split_heads, row_tile=256))
    x_out, bound_out = jax.block_until_ready(run(x, frame_head, bound_head))

    def ref_head(x, w1, b1, w2, b2):          # eval mode: dropout is identity
        return jnp.maximum(x @ w1 + b1, 0.0) @ w2 + b2

    x_out_ref = ref_head(x, *frame_head)
    bound_ref = ref_head(x, *bound_head)[..., 0]

    assert x_out.shape == (batch, frames, num_class)
    assert bound_out.shape == (batch, frames)
    assert jnp.allclose(x_out, x_out_ref, atol=1e-4, rtol=1e-4), "frame head mismatch"
    assert jnp.allclose(bound_out, bound_ref, atol=1e-4, rtol=1e-4), "bound head mismatch"

    # bf16-operand path (v6e/v7x fast MXU, half the DMA bytes); f32 accumulation.
    run_bf16 = jax.jit(functools.partial(
        phoneme_split_heads, row_tile=256, compute_dtype=jnp.bfloat16))
    x_out_b, bound_b = jax.block_until_ready(run_bf16(x, frame_head, bound_head))
    assert jnp.allclose(x_out_b, x_out_ref, atol=5e-2, rtol=5e-2), "bf16 frame head drift"
    assert jnp.allclose(bound_b, bound_ref, atol=5e-2, rtol=5e-2), "bf16 bound head drift"

    print("KERNEL_OK")
</pallas_src>

<mosaic_0001>
module attributes {stable_mosaic.version = 11 : i64} {
  func.func @_fused_mlp_kernel(%arg0: i32, %arg1: memref<256x256xf32, #tpu.memory_space<vmem>>, %arg2: memref<256x256xf32, #tpu.memory_space<vmem>>, %arg3: memref<1x256xf32, #tpu.memory_space<vmem>>, %arg4: memref<256x128xf32, #tpu.memory_space<vmem>>, %arg5: memref<1x128xf32, #tpu.memory_space<vmem>>, %arg6: memref<256x128xf32, #tpu.memory_space<vmem>>) attributes {dimension_semantics = [#tpu.dimension_semantics<parallel>], iteration_bounds = array<i64: 2>, scalar_prefetch = 0 : i64, scratch_operands = 0 : i64, tpu.core_type = #tpu.core_type<tc>, window_params = [{transform_indices = @transform_0, window_bounds = array<i64: 256, 256>}, {pipeline_mode = #tpu.pipeline_mode<synchronous>, transform_indices = @transform_1, window_bounds = array<i64: 256, 256>}, {pipeline_mode = #tpu.pipeline_mode<synchronous>, transform_indices = @transform_2, window_bounds = array<i64: 1, 256>}, {pipeline_mode = #tpu.pipeline_mode<synchronous>, transform_indices = @transform_3, window_bounds = array<i64: 256, 128>}, {pipeline_mode = #tpu.pipeline_mode<synchronous>, transform_indices = @transform_4, window_bounds = array<i64: 1, 128>}, {transform_indices = @transform_5, window_bounds = array<i64: 256, 128>}]} {
    %c0 = arith.constant 0 : index
    %c0_0 = arith.constant 0 : index
    %0 = vector.load %arg1[%c0, %c0_0] : memref<256x256xf32, #tpu.memory_space<vmem>>, vector<256x256xf32>
    %c0_1 = arith.constant 0 : index
    %c0_2 = arith.constant 0 : index
    %1 = vector.load %arg2[%c0_1, %c0_2] : memref<256x256xf32, #tpu.memory_space<vmem>>, vector<256x256xf32>
    %cst = arith.constant dense<0.000000e+00> : vector<256x256xf32>
    %2 = tpu.matmul %0, %1, %cst {dimension_numbers = #tpu.dot_dimension_numbers<[1], [0], [0], [1], [0, 0, 1, 1], [], []>} : vector<256x256xf32>, vector<256x256xf32>, vector<256x256xf32> -> vector<256x256xf32>
    %c0_3 = arith.constant 0 : index
    %c0_4 = arith.constant 0 : index
    %3 = vector.load %arg3[%c0_3, %c0_4] : memref<1x256xf32, #tpu.memory_space<vmem>>, vector<1x256xf32>
    %4 = vector.broadcast %3 : vector<1x256xf32> to vector<256x256xf32>
    %5 = arith.addf %2, %4 : vector<256x256xf32>
    %cst_5 = arith.constant 0.000000e+00 : f32
    %6 = vector.broadcast %cst_5 : f32 to vector<256x256xf32>
    %7 = arith.maximumf %5, %6 : vector<256x256xf32>
    %c0_6 = arith.constant 0 : index
    %c0_7 = arith.constant 0 : index
    %8 = vector.load %arg4[%c0_6, %c0_7] : memref<256x128xf32, #tpu.memory_space<vmem>>, vector<256x128xf32>
    %cst_8 = arith.constant dense<0.000000e+00> : vector<256x128xf32>
    %9 = tpu.matmul %7, %8, %cst_8 {dimension_numbers = #tpu.dot_dimension_numbers<[1], [0], [0], [1], [0, 0, 1, 1], [], []>} : vector<256x256xf32>, vector<256x128xf32>, vector<256x128xf32> -> vector<256x128xf32>
    %c0_9 = arith.constant 0 : index
    %c0_10 = arith.constant 0 : index
    %10 = vector.load %arg5[%c0_9, %c0_10] : memref<1x128xf32, #tpu.memory_space<vmem>>, vector<1x128xf32>
    %11 = vector.broadcast %10 : vector<1x128xf32> to vector<256x128xf32>
    %12 = arith.addf %9, %11 : vector<256x128xf32>
    %c0_11 = arith.constant 0 : index
    %c0_12 = arith.constant 0 : index
    %13 = vector.load %arg6[%c0_11, %c0_12] : memref<256x128xf32, #tpu.memory_space<vmem>>, vector<256x128xf32>
    tpu.vector_store %arg6[%c0_11, %c0_12], %12 {strides = array<i32>} : memref<256x128xf32, #tpu.memory_space<vmem>>, vector<256x128xf32>,
    return
  }
  func.func @transform_0(%arg0: i32) -> (i32, i32) {
    %c0_i32 = arith.constant 0 : i32
    %c0_i32_0 = arith.constant 0 : i32
    return %arg0, %c0_i32 : i32, i32
  }
  func.func @transform_1(%arg0: i32) -> (i32, i32) {
    %c0_i32 = arith.constant 0 : i32
    %c0_i32_0 = arith.constant 0 : i32
    %c0_i32_1 = arith.constant 0 : i32
    return %c0_i32, %c0_i32_0 : i32, i32
  }
  func.func @transform_2(%arg0: i32) -> (i32, i32) {
    %c0_i32 = arith.constant 0 : i32
    %c0_i32_0 = arith.constant 0 : i32
    %c0_i32_1 = arith.constant 0 : i32
    return %c0_i32, %c0_i32_0 : i32, i32
  }
  func.func @transform_3(%arg0: i32) -> (i32, i32) {
    %c0_i32 = arith.constant 0 : i32
    %c0_i32_0 = arith.constant 0 : i32
    %c0_i32_1 = arith.constant 0 : i32
    return %c0_i32, %c0_i32_0 : i32, i32
  }
  func.func @transform_4(%arg0: i32) -> (i32, i32) {
    %c0_i32 = arith.constant 0 : i32
    %c0_i32_0 = arith.constant 0 : i32
    %c0_i32_1 = arith.constant 0 : i32
    return %c0_i32, %c0_i32_0 : i32, i32
  }
  func.func @transform_5(%arg0: i32) -> (i32, i32) {
    %c0_i32 = arith.constant 0 : i32
    %c0_i32_0 = arith.constant 0 : i32
    return %arg0, %c0_i32 : i32, i32
  }
}

</mosaic_0001>

<bundles_post_ra>
// kernel: phoneme_split_heads.1
= control target key start
LH: loop header
LB: loop body
LE: loop exit
PB: predicated region body
PF: predicated region fallthrough
CT: control target
= control target key end

     0   :  { %s1106_s18 = smov 0   ;;  %s1655_s0 = inlined_call_operand.vmem [shape: f32[512,256], index: 0, kind: input, shape index: {}]   ;;  %s1656_s1 = inlined_call_operand.vmem [shape: f32[256,256], index: 1, kind: input, shape index: {}]   ;;  %s1657_s2 = inlined_call_operand.vmem [shape: f32[1,256], index: 2, kind: input, shape index: {}]   ;;  %s1658_s3 = inlined_call_operand.vmem [shape: f32[256,128], index: 3, kind: input, shape index: {}]   ;;  %s1659_s4 = inlined_call_operand.vmem [shape: f32[1,128], index: 4, kind: input, shape index: {}]   ;;  %s1660_s5 = inlined_call_operand.vmem [shape: f32[512,128], index: 5, kind: output, shape index: {}]  }
   0x1 LB: > { %s1044_s19 = sadd.s32 4294967295, %s1073_s18   ;;  %p1048_p0 = scmp.ge.s32.totalorder %s1073_s18, 1  ;;  %s1073_s18 = sphi %s1106_s18, %s15_s18  }
   0x2   : > { %p189_p1 = scmp.lt.s32.totalorder %s1073_s18, 3 }
   0x4   : > { %p190_p2 = pnand %p1048_p0, %p189_p1 }
   0x5   : > { %s1049_s9 = sshll.u32 (!%p190_p2), %s1044_s19, 5 }
   0x6   : > { %193 = sbr.rel (%p190_p2) target bundleno = 596 (0x254), region = 40  ;;  %p219_p3 = scmp.lt.s32.totalorder (!%p190_p2), %s1049_s9, 63 }
   0xb   : > { %v326_v0 = vld [vmem:[%s1656_s1 + $0xf8] sm:$0xff]  ;;  %v325_v1 = vld [vmem:[%s1656_s1 + $0xf0] sm:$0xff]  ;;  %v324_v2 = vld [vmem:[%s1656_s1 + $0xe8] sm:$0xff]  ;;  %s1662_s9 = smov (!%p219_p3, %s1049_s9), 63 }
   0xc   : > { %371 = vmatprep.subr.mxu0 %v326_v0  ;;  %v323_v3 = vld [vmem:[%s1656_s1 + $0xe0] sm:$0xff]  ;;  %v322_v4 = vld [vmem:[%s1656_s1 + $0xd8] sm:$0xff]  ;;  %v321_v5 = vld [vmem:[%s1656_s1 + $0xd0] sm:$0xff]  ;;  %s1057_s8 = sshll.u32 %s1662_s9, 4 }
   0xd   : > { %372 = vmatpush1.msra.mxu0 %v325_v1  ;;  %v320_v6 = vld [vmem:[%s1656_s1 + $0xc8] sm:$0xff]  ;;  %v319_v7 = vld [vmem:[%s1656_s1 + $0xc0] sm:$0xff]  ;;  %v318_v8 = vld [vmem:[%s1656_s1 + $0xb8] sm:$0xff]  ;;  %s1183_s19 = scalar_lea.vmem %s1655_s0, %s1057_s8 }
   0xe   : > { %373 = vmatprep.subr.mxu0 %v324_v2  ;;  %v317_v9 = vld [vmem:[%s1656_s1 + $0xb0] sm:$0xff]  ;;  %v316_v10 = vld [vmem:[%s1656_s1 + $0xa8] sm:$0xff]  ;;  %v315_v11 = vld [vmem:[%s1656_s1 + $0xa0] sm:$0xff] }
   0xf   : > { %374 = vmatpush1.msra.mxu0 %v323_v3  ;;  %v314_v12 = vld [vmem:[%s1656_s1 + $0x98] sm:$0xff]  ;;  %v313_v13 = vld [vmem:[%s1656_s1 + $0x90] sm:$0xff]  ;;  %v312_v14 = vld [vmem:[%s1656_s1 + $0x88] sm:$0xff]  ;;  %v1075_v3 = vmov 0.0  }
  0x10   : > { %375 = vmatprep.subr.mxu0 %v322_v4  ;;  %v311_v15 = vld [vmem:[%s1656_s1 + $0x80] sm:$0xff]  ;;  %v310_v16 = vld [vmem:[%s1656_s1 + $0x78] sm:$0xff]  ;;  %v309_v17 = vld [vmem:[%s1656_s1 + $0x70] sm:$0xff]  ;;  %731 = vmatprep.subr.mxu1 %v1075_v3 }
  0x11   : > { %376 = vmatpush1.msra.mxu0 %v321_v5  ;;  %v308_v18 = vld [vmem:[%s1656_s1 + $0x68] sm:$0xff]  ;;  %v307_v19 = vld [vmem:[%s1656_s1 + $0x60] sm:$0xff]  ;;  %v306_v20 = vld [vmem:[%s1656_s1 + $0x58] sm:$0xff] }
  0x12   : > { %377 = vmatprep.subr.mxu0 %v320_v6  ;;  %v305_v21 = vld [vmem:[%s1656_s1 + $0x50] sm:$0xff]  ;;  %v304_v22 = vld [vmem:[%s1656_s1 + $0x48] sm:$0xff]  ;;  %v303_v23 = vld [vmem:[%s1656_s1 + $0x40] sm:$0xff] }
  0x13   : > { %378 = vmatpush1.msra.mxu0 %v319_v7  ;;  %v232_v24 = vld [vmem:[%s1183_s19 + $0x8] sm:$0xff]  ;;  %v302_v25 = vld [vmem:[%s1656_s1 + $0x38] sm:$0xff]  ;;  %v301_v26 = vld [vmem:[%s1656_s1 + $0x30] sm:$0xff] }
  0x14   : > { %379 = vmatprep.subr.mxu0 %v318_v8  ;;  %435 = vmatprep.mubr.f32.mxu0 %v232_v24  ;;  %v300_v27 = vld [vmem:[%s1656_s1 + $0x28] sm:$0xff]  ;;  %v299_v28 = vld [vmem:[%s1656_s1 + $0x20] sm:$0xff]  ;;  %v298_v29 = vld [vmem:[%s1656_s1 + $0x18] sm:$0xff] }
  0x15   : > { %380 = vmatpush1.msra.mxu0 %v317_v9  ;;  %v297_v30 = vld [vmem:[%s1656_s1 + $0x10] sm:$0xff]  ;;  %v296_v31 = vld [vmem:[%s1656_s1 + $0x8] sm:$0xff]  ;;  %v295_v32 = vld [vmem:[%s1656_s1] sm:$0xff] }
  0x16   : > { %381 = vmatprep.subr.mxu0 %v316_v10  ;;  %v358_v33 = vld [vmem:[%s1656_s1 + $0x1f8] sm:$0xff]  ;;  %v357_v34 = vld [vmem:[%s1656_s1 + $0x1f0] sm:$0xff]  ;;  %v356_v35 = vld [vmem:[%s1656_s1 + $0x1e8] sm:$0xff] }
  0x17   : > { %382 = vmatpush1.msra.mxu0 %v315_v11  ;;  %v355_v36 = vld [vmem:[%s1656_s1 + $0x1e0] sm:$0xff]  ;;  %v354_v37 = vld [vmem:[%s1656_s1 + $0x1d8] sm:$0xff]  ;;  %v353_v38 = vld [vmem:[%s1656_s1 + $0x1d0] sm:$0xff] }
  0x18   : > { %383 = vmatprep.subr.mxu0 %v314_v12  ;;  %v352_v39 = vld [vmem:[%s1656_s1 + $0x1c8] sm:$0xff]  ;;  %v351_v40 = vld [vmem:[%s1656_s1 + $0x1c0] sm:$0xff]  ;;  %v350_v41 = vld [vmem:[%s1656_s1 + $0x1b8] sm:$0xff] }
  0x19   : > { %384 = vmatpush1.msra.mxu0 %v313_v13  ;;  %v349_v42 = vld [vmem:[%s1656_s1 + $0x1b0] sm:$0xff]  ;;  %v348_v43 = vld [vmem:[%s1656_s1 + $0x1a8] sm:$0xff]  ;;  %v347_v44 = vld [vmem:[%s1656_s1 + $0x1a0] sm:$0xff] }
  0x1a   : > { %385 = vmatprep.subr.mxu0 %v312_v14  ;;  %v346_v45 = vld [vmem:[%s1656_s1 + $0x198] sm:$0xff]  ;;  %v345_v46 = vld [vmem:[%s1656_s1 + $0x190] sm:$0xff]  ;;  %v344_v47 = vld [vmem:[%s1656_s1 + $0x188] sm:$0xff] }
  0x1b   : > { %386 = vmatpush1.msra.mxu0 %v311_v15  ;;  %v343_v48 = vld [vmem:[%s1656_s1 + $0x180] sm:$0xff]  ;;  %v342_v49 = vld [vmem:[%s1656_s1 + $0x178] sm:$0xff]  ;;  %v341_v50 = vld [vmem:[%s1656_s1 + $0x170] sm:$0xff] }
  0x1c   : > { %387 = vmatprep.subr.mxu0 %v310_v16  ;;  %v340_v51 = vld [vmem:[%s1656_s1 + $0x168] sm:$0xff]  ;;  %v339_v52 = vld [vmem:[%s1656_s1 + $0x160] sm:$0xff]  ;;  %v338_v53 = vld [vmem:[%s1656_s1 + $0x158] sm:$0xff] }
  0x1d   : > { %388 = vmatpush1.msra.mxu0 %v309_v17  ;;  %v337_v54 = vld [vmem:[%s1656_s1 + $0x150] sm:$0xff]  ;;  %v336_v55 = vld [vmem:[%s1656_s1 + $0x148] sm:$0xff]  ;;  %v335_v56 = vld [vmem:[%s1656_s1 + $0x140] sm:$0xff] }
  0x1e   : > { %389 = vmatprep.subr.mxu0 %v308_v18  ;;  %v334_v57 = vld [vmem:[%s1656_s1 + $0x138] sm:$0xff]  ;;  %v333_v58 = vld [vmem:[%s1656_s1 + $0x130] sm:$0xff]  ;;  %v332_v59 = vld [vmem:[%s1656_s1 + $0x128] sm:$0xff] }
  0x1f   : > { %390 = vmatpush1.msra.mxu0 %v307_v19  ;;  %v331_v60 = vld [vmem:[%s1656_s1 + $0x120] sm:$0xff]  ;;  %v330_v61 = vld [vmem:[%s1656_s1 + $0x118] sm:$0xff]  ;;  %v329_v62 = vld [vmem:[%s1656_s1 + $0x110] sm:$0xff] }
  0x20   : > { %391 = vmatprep.subr.mxu0 %v306_v20  ;;  %v328_v63 = vld [vmem:[%s1656_s1 + $0x108] sm:$0xff]  ;;  %v327_v0 = vld [vmem:[%s1656_s1 + $0x100] sm:$0xff]  ;;  %v707_v1 = vld [vmem:[%s1658_s3 + $0x78] sm:$0xff] }
  0x21   : > { %392 = vmatpush1.msra.mxu0 %v305_v21  ;;  %v231_v2 = vld [vmem:[%s1183_s19] sm:$0xff]  ;;  %v706_v4 = vld [vmem:[%s1658_s3 + $0x70] sm:$0xff]  ;;  %v234_v5 = vld [vmem:[%s1183_s19 + $0x18] sm:$0xff]  ;;  %732 = vmatpush1.msra.mxu1 %v707_v1 }
  0x22   : > { %393 = vmatprep.subr.mxu0 %v304_v22  ;;  %733 = vmatprep.subr.mxu1 %v1075_v3  ;;  %v705_v6 = vld [vmem:[%s1658_s3 + $0x68] sm:$0xff]  ;;  %v233_v7 = vld [vmem:[%s1183_s19 + $0x10] sm:$0xff]  ;;  %v704_v8 = vld [vmem:[%s1658_s3 + $0x60] sm:$0xff] }
  0x23   : > { %394 = vmatpush1.msra.mxu0 %v303_v23  ;;  %734 = vmatpush1.msra.mxu1 %v706_v4  ;;  %v236_v9 = vld [vmem:[%s1183_s19 + $0x28] sm:$0xff]  ;;  %v703_v10 = vld [vmem:[%s1658_s3 + $0x58] sm:$0xff]  ;;  %v235_v11 = vld [vmem:[%s1183_s19 + $0x20] sm:$0xff] }
  0x24   : > { %395 = vmatprep.subr.mxu0 %v302_v25  ;;  %735 = vmatprep.subr.mxu1 %v1075_v3  ;;  %v702_v12 = vld [vmem:[%s1658_s3 + $0x50] sm:$0xff]  ;;  %v238_v13 = vld [vmem:[%s1183_s19 + $0x38] sm:$0xff]  ;;  %v701_v14 = vld [vmem:[%s1658_s3 + $0x48] sm:$0xff] }
  0x25   : > { %396 = vmatpush1.msra.mxu0 %v301_v26  ;;  %736 = vmatpush1.msra.mxu1 %v705_v6  ;;  %v237_v15 = vld [vmem:[%s1183_s19 + $0x30] sm:$0xff]  ;;  %v700_v16 = vld [vmem:[%s1658_s3 + $0x40] sm:$0xff]  ;;  %v240_v17 = vld [vmem:[%s1183_s19 + $0x48] sm:$0xff] }
  0x26   : > { %397 = vmatprep.subr.mxu0 %v300_v27  ;;  %737 = vmatprep.subr.mxu1 %v1075_v3  ;;  %v699_v18 = vld [vmem:[%s1658_s3 + $0x38] sm:$0xff]  ;;  %v239_v19 = vld [vmem:[%s1183_s19 + $0x40] sm:$0xff]  ;;  %v698_v20 = vld [vmem:[%s1658_s3 + $0x30] sm:$0xff] }
  0x27   : > { %398 = vmatpush1.msra.mxu0 %v299_v28  ;;  %738 = vmatpush1.msra.mxu1 %v704_v8  ;;  %v242_v21 = vld [vmem:[%s1183_s19 + $0x58] sm:$0xff]  ;;  %v697_v22 = vld [vmem:[%s1658_s3 + $0x28] sm:$0xff]  ;;  %v241_v23 = vld [vmem:[%s1183_s19 + $0x50] sm:$0xff] }
  0x28   : > { %399 = vmatprep.subr.mxu0 %v298_v29  ;;  %739 = vmatprep.subr.mxu1 %v1075_v3  ;;  %v696_v24 = vld [vmem:[%s1658_s3 + $0x20] sm:$0xff]  ;;  %v244_v25 = vld [vmem:[%s1183_s19 + $0x68] sm:$0xff]  ;;  %v695_v26 = vld [vmem:[%s1658_s3 + $0x18] sm:$0xff] }
  0x29   : > { %400 = vmatpush1.msra.mxu0 %v297_v30  ;;  %740 = vmatpush1.msra.mxu1 %v703_v10  ;;  %v243_v27 = vld [vmem:[%s1183_s19 + $0x60] sm:$0xff]  ;;  %v694_v28 = vld [vmem:[%s1658_s3 + $0x10] sm:$0xff]  ;;  %v246_v29 = vld [vmem:[%s1183_s19 + $0x78] sm:$0xff] }
  0x2a   : > { %401 = vmatprep.subr.mxu0 %v296_v31  ;;  %741 = vmatprep.subr.mxu1 %v1075_v3  ;;  %v693_v30 = vld [vmem:[%s1658_s3 + $0x8] sm:$0xff]  ;;  %v245_v31 = vld [vmem:[%s1183_s19 + $0x70] sm:$0xff]  ;;  %v267_v6 = vld [vmem:[%s1183_s19 + $0x120] sm:$0xff] }
  0x2b   : > { %402 = vmatpush1.msra.mxu0 %v295_v32  ;;  %742 = vmatpush1.msra.mxu1 %v702_v12  ;;  %v692_v32 = vld [vmem:[%s1658_s3] sm:$0xff]  ;;  %v265_v1 = vld [vmem:[%s1183_s19 + $0x110] sm:$0xff]  ;;  %v272_v10 = vld [vmem:[%s1183_s19 + $0x148] sm:$0xff] }
  0x2c   : > { %403 = vmatprep.subr.mxu0 %v358_v33  ;;  %743 = vmatprep.subr.mxu1 %v1075_v3  ;;  %v248_v33 = vld [vmem:[%s1183_s19 + $0x88] sm:$0xff]  ;;  %v710_v4 = vld [vmem:[%s1658_s3 + $0x90] sm:$0xff]  ;;  %v708_v8 = vld [vmem:[%s1658_s3 + $0x80] sm:$0xff] }
  0x2d   : > { %404 = vmatpush2.msra.mxu0 %v357_v34  ;;  %744 = vmatpush1.msra.mxu1 %v701_v14  ;;  %v723_v34 = vld [vmem:[%s1658_s3 + $0xf8] sm:$0xff]  ;;  %v275_v14 = vld [vmem:[%s1183_s19 + $0x160] sm:$0xff] }
  0x2e   : > { %405 = vmatprep.subr.mxu0 %v356_v35  ;;  %745 = vmatprep.subr.mxu1 %v1075_v3  ;;  %v247_v35 = vld [vmem:[%s1183_s19 + $0x80] sm:$0xff]  ;;  %v274_v12 = vld [vmem:[%s1183_s19 + $0x158] sm:$0xff] }
  0x2f   : > { %406 = vmatpush2.msra.mxu0 %v355_v36  ;;  %746 = vmatpush1.msra.mxu1 %v700_v16  ;;  %v722_v36 = vld [vmem:[%s1658_s3 + $0xf0] sm:$0xff] }
  0x30   : > { %407 = vmatprep.subr.mxu0 %v354_v37  ;;  %747 = vmatprep.subr.mxu1 %v1075_v3  ;;  %v250_v37 = vld [vmem:[%s1183_s19 + $0x98] sm:$0xff]  ;;  %v277_v16 = vld [vmem:[%s1183_s19 + $0x170] sm:$0xff] }
  0x31   : > { %408 = vmatpush2.msra.mxu0 %v353_v38  ;;  %748 = vmatpush1.msra.mxu1 %v699_v18  ;;  %v721_v38 = vld [vmem:[%s1658_s3 + $0xe8] sm:$0xff]  ;;  %v279_v18 = vld [vmem:[%s1183_s19 + $0x180] sm:$0xff] }
  0x32   : > { %409 = vmatprep.subr.mxu0 %v352_v39  ;;  %749 = vmatprep.subr.mxu1 %v1075_v3  ;;  %v249_v39 = vld [vmem:[%s1183_s19 + $0x90] sm:$0xff] }
  0x33   : > { %410 = vmatpush2.msra.mxu0 %v351_v40  ;;  %750 = vmatpush1.msra.mxu1 %v698_v20  ;;  %v720_v40 = vld [vmem:[%s1658_s3 + $0xe0] sm:$0xff]  ;;  %v281_v20 = vld [vmem:[%s1183_s19 + $0x190] sm:$0xff] }
  0x34   : > { %411 = vmatprep.subr.mxu0 %v350_v41  ;;  %751 = vmatprep.subr.mxu1 %v1075_v3  ;;  %v252_v41 = vld [vmem:[%s1183_s19 + $0xa8] sm:$0xff] }
  0x35   : > { %412 = vmatpush2.msra.mxu0 %v349_v42  ;;  %752 = vmatpush1.msra.mxu1 %v697_v22  ;;  %v719_v42 = vld [vmem:[%s1658_s3 + $0xd8] sm:$0xff]  ;;  %v283_v22 = vld [vmem:[%s1183_s19 + $0x1a0] sm:$0xff] }
  0x36   : > { %413 = vmatprep.subr.mxu0 %v348_v43  ;;  %753 = vmatprep.subr.mxu1 %v1075_v3  ;;  %v251_v43 = vld [vmem:[%s1183_s19 + $0xa0] sm:$0xff] }
  0x37   : > { %414 = vmatpush2.msra.mxu0 %v347_v44  ;;  %754 = vmatpush1.msra.mxu1 %v696_v24  ;;  %v718_v44 = vld [vmem:[%s1658_s3 + $0xd0] sm:$0xff] }
  0x38   : > { %415 = vmatprep.subr.mxu0 %v346_v45  ;;  %755 = vmatprep.subr.mxu1 %v1075_v3  ;;  %v254_v45 = vld [vmem:[%s1183_s19 + $0xb8] sm:$0xff]  ;;  %v285_v24 = vld [vmem:[%s1183_s19 + $0x1b0] sm:$0xff] }
  0x39   : > { %416 = vmatpush2.msra.mxu0 %v345_v46  ;;  %756 = vmatpush1.msra.mxu1 %v695_v26  ;;  %v717_v46 = vld [vmem:[%s1658_s3 + $0xc8] sm:$0xff]  ;;  %v287_v26 = vld [vmem:[%s1183_s19 + $0x1c0] sm:$0xff] }
  0x3a   : > { %417 = vmatprep.subr.mxu0 %v344_v47  ;;  %757 = vmatprep.subr.mxu1 %v1075_v3  ;;  %v253_v47 = vld [vmem:[%s1183_s19 + $0xb0] sm:$0xff] }
  0x3b   : > { %418 = vmatpush2.msra.mxu0 %v343_v48  ;;  %758 = vmatpush1.msra.mxu1 %v694_v28  ;;  %v716_v48 = vld [vmem:[%s1658_s3 + $0xc0] sm:$0xff]  ;;  %v289_v28 = vld [vmem:[%s1183_s19 + $0x1d0] sm:$0xff] }
  0x3c   : > { %419 = vmatprep.subr.mxu0 %v342_v49  ;;  %759 = vmatprep.subr.mxu1 %v1075_v3  ;;  %v256_v49 = vld [vmem:[%s1183_s19 + $0xc8] sm:$0xff] }
  0x3d   : > { %420 = vmatpush2.msra.mxu0 %v341_v50  ;;  %760 = vmatpush1.msra.mxu1 %v693_v30  ;;  %v715_v50 = vld [vmem:[%s1658_s3 + $0xb8] sm:$0xff]  ;;  %v291_v30 = vld [vmem:[%s1183_s19 + $0x1e0] sm:$0xff] }
  0x3e   : > { %421 = vmatprep.subr.mxu0 %v340_v51  ;;  %761 = vmatprep.subr.mxu1 %v1075_v3  ;;  %v255_v51 = vld [vmem:[%s1183_s19 + $0xc0] sm:$0xff] }
  0x3f   : > { %422 = vmatpush2.msra.mxu0 %v339_v52  ;;  %762 = vmatpush1.msra.mxu1 %v692_v32  ;;  %v714_v52 = vld [vmem:[%s1658_s3 + $0xb0] sm:$0xff] }
  0x40   : > { %423 = vmatprep.subr.mxu0 %v338_v53  ;;  %763 = vmatprep.subr.mxu1 %v1075_v3  ;;  %v258_v53 = vld [vmem:[%s1183_s19 + $0xd8] sm:$0xff]  ;;  %v293_v32 = vld [vmem:[%s1183_s19 + $0x1f0] sm:$0xff] }
  0x41   : > { %424 = vmatpush2.msra.mxu0 %v337_v54  ;;  %764 = vmatpush2.msra.mxu1 %v723_v34  ;;  %v713_v54 = vld [vmem:[%s1658_s3 + $0xa8] sm:$0xff] }
  0x42   : > { %425 = vmatprep.subr.mxu0 %v336_v55  ;;  %765 = vmatprep.subr.mxu1 %v1075_v3  ;;  %v257_v55 = vld [vmem:[%s1183_s19 + $0xd0] sm:$0xff] }
  0x43   : > { %426 = vmatpush2.msra.mxu0 %v335_v56  ;;  %766 = vmatpush2.msra.mxu1 %v722_v36  ;;  %v712_v56 = vld [vmem:[%s1658_s3 + $0xa0] sm:$0xff] }
  0x44   : > { %427 = vmatprep.subr.mxu0 %v334_v57  ;;  %767 = vmatprep.subr.mxu1 %v1075_v3  ;;  %v260_v57 = vld [vmem:[%s1183_s19 + $0xe8] sm:$0xff]  ;;  %v359_v36 = vld [vmem:[%s1657_s2] sm:$0x3] }
  0x45   : > { %428 = vmatpush2.msra.mxu0 %v333_v58  ;;  %768 = vmatpush2.msra.mxu1 %v721_v38  ;;  %v259_v58 = vld [vmem:[%s1183_s19 + $0xe0] sm:$0xff] }
  0x46   : > { %429 = vmatprep.subr.mxu0 %v332_v59  ;;  %769 = vmatprep.subr.mxu1 %v1075_v3  ;;  %v262_v59 = vld [vmem:[%s1183_s19 + $0xf8] sm:$0xff] }
  0x47   : > { %430 = vmatpush2.msra.mxu0 %v331_v60  ;;  %770 = vmatpush2.msra.mxu1 %v720_v40  ;;  %v261_v60 = vld [vmem:[%s1183_s19 + $0xf0] sm:$0xff] }
  0x48   : > { %431 = vmatprep.subr.mxu0 %v330_v61  ;;  %771 = vmatprep.subr.mxu1 %v1075_v3  ;;  %v264_v61 = vld [vmem:[%s1183_s19 + $0x108] sm:$0xff] }
  0x49   : > { %432 = vmatpush2.msra.mxu0 %v329_v62  ;;  %772 = vmatpush2.msra.mxu1 %v719_v42  ;;  %v263_v62 = vld [vmem:[%s1183_s19 + $0x100] sm:$0xff] }
  0x4a   : > { %433 = vmatprep.subr.mxu0 %v328_v63  ;;  %773 = vmatprep.subr.mxu1 %v1075_v3  ;;  %v266_v63 = vld [vmem:[%s1183_s19 + $0x118] sm:$0xff] }
  0x4b   : > { %434 = vmatpush2.msra.mxu0 %v327_v0  ;;  %774 = vmatpush2.msra.mxu1 %v718_v44  ;;  %v711_v0 = vld [vmem:[%s1658_s3 + $0x98] sm:$0xff] }
  0x4c   : > { %436 = vmatmul.mubr.f32.vlgmr.msra.gmra.mxu0 %v231_v2  ;;  %775 = vmatprep.subr.mxu1 %v1075_v3  ;;  %v268_v2 = vld [vmem:[%s1183_s19 + $0x128] sm:$0xff] }
  0x4d   : > { %441 = vmatprep.mubr.f32.mxu0 %v234_v5  ;;  %776 = vmatpush2.msra.mxu1 %v717_v46  ;;  %v709_v5 = vld [vmem:[%s1658_s3 + $0x88] sm:$0xff] }
  0x4e   : > { %777 = vmatprep.subr.mxu1 %v1075_v3 }
  0x4f   : > { %778 = vmatpush2.msra.mxu1 %v716_v48 }
  0x50   : > { %442 = vmatmul.mubr.f32.gmra.mxu0 %v233_v7  ;;  %779 = vmatprep.subr.mxu1 %v1075_v3  ;;  %v270_v7 = vld [vmem:[%s1183_s19 + $0x138] sm:$0xff] }
  0x51   : > { %447 = vmatprep.mubr.f32.mxu0 %v236_v9  ;;  %780 = vmatpush2.msra.mxu1 %v715_v50  ;;  %v269_v9 = vld [vmem:[%s1183_s19 + $0x130] sm:$0xff] }
  0x52   : > { %781 = vmatprep.subr.mxu1 %v1075_v3 }
  0x53   : > { %782 = vmatpush2.msra.mxu1 %v714_v52 }
  0x54   : > { %448 = vmatmul.mubr.f32.gmra.mxu0 %v235_v11  ;;  %783 = vmatprep.subr.mxu1 %v1075_v3  ;;  %v271_v11 = vld [vmem:[%s1183_s19 + $0x140] sm:$0xff] }
  0x55   : > { %453 = vmatprep.mubr.f32.mxu0 %v238_v13  ;;  %784 = vmatpush2.msra.mxu1 %v713_v54  ;;  %v276_v13 = vld [vmem:[%s1183_s19 + $0x168] sm:$0xff] }
  0x56   : > { %785 = vmatprep.subr.mxu1 %v1075_v3 }
  0x57   : > { %786 = vmatpush2.msra.mxu1 %v712_v56 }
  0x58   : > { %454 = vmatmul.mubr.f32.gmra.mxu0 %v237_v15  ;;  %787 = vmatprep.subr.mxu1 %v1075_v3  ;;  %v278_v15 = vld [vmem:[%s1183_s19 + $0x178] sm:$0xff] }
  0x59   : > { %459 = vmatprep.mubr.f32.mxu0 %v240_v17  ;;  %788 = vmatpush2.msra.mxu1 %v711_v0  ;;  %v280_v17 = vld [vmem:[%s1183_s19 + $0x188] sm:$0xff] }
  0x5a   : > { %789 = vmatprep.subr.mxu1 %v1075_v3 }
  0x5b   : > { %790 = vmatpush2.msra.mxu1 %v710_v4 }
  0x5c   : > { %460 = vmatmul.mubr.f32.gmra.mxu0 %v239_v19  ;;  %791 = vmatprep.subr.mxu1 %v1075_v3  ;;  %v282_v19 = vld [vmem:[%s1183_s19 + $0x198] sm:$0xff] }
  0x5d   : > { %465 = vmatprep.mubr.f32.mxu0 %v242_v21  ;;  %792 = vmatpush2.msra.mxu1 %v709_v5  ;;  %v284_v21 = vld [vmem:[%s1183_s19 + $0x1a8] sm:$0xff] }
  0x5e   : > { %793 = vmatprep.subr.mxu1 %v1075_v3  ;;  %v273_v3 = vld [vmem:[%s1183_s19 + $0x150] sm:$0xff] }
  0x5f   : > { %794 = vmatpush2.msra.mxu1 %v708_v8 }
  0x60   : > { %466 = vmatmul.mubr.f32.gmra.mxu0 %v241_v23  ;;  %v286_v23 = vld [vmem:[%s1183_s19 + $0x1b8] sm:$0xff] }
  0x61   : > { %471 = vmatprep.mubr.f32.mxu0 %v244_v25  ;;  %v288_v25 = vld [vmem:[%s1183_s19 + $0x1c8] sm:$0xff] }
  0x64   : > { %472 = vmatmul.mubr.f32.gmra.mxu0 %v243_v27  ;;  %v290_v27 = vld [vmem:[%s1183_s19 + $0x1d8] sm:$0xff] }
  0x65   : > { %477 = vmatprep.mubr.f32.mxu0 %v246_v29  ;;  %v292_v29 = vld [vmem:[%s1183_s19 + $0x1e8] sm:$0xff] }
  0x68   : > { %478 = vmatmul.mubr.f32.gmra.mxu0 %v245_v31  ;;  %v294_v31 = vld [vmem:[%s1183_s19 + $0x1f8] sm:$0xff]  ;;  %s1053_s19 = sshll.u32 %s1662_s9, 3 }
  0x69   : > { %483 = vmatprep.mubr.f32.mxu0 %v248_v33  ;;  %v361_v33 = vlaneseq  ;;  %s1586_s22 = scalar_lea.vmem %s1660_s5, %s1053_s19 }
  0x6b   : > { %v362_v34 = vshrl.u32 %v361_v33, 7 }
  0x6c   : > { %484 = vmatmul.mubr.f32.gmra.mxu0 %v247_v35 }
  0x6d   : > { %489 = vmatprep.mubr.f32.mxu0 %v250_v37  ;;  %v363_v35 = vsub.s32 0, %v362_v34  ;;  %v367_v37 = vsub.s32 1, %v362_v34 }
  0x6f   : > { %v1509_v38 = vrot.slane %v359_v36, %v363_v35 }
  0x70   : > { %490 = vmatmul.mubr.f32.gmra.mxu0 %v249_v39  ;;  %v1511_v39 = vrot.slane %v359_v36, %v367_v37 }
  0x71   : > { %495 = vmatprep.mubr.f32.mxu0 %v252_v41 }
  0x74   : > { %496 = vmatmul.mubr.f32.gmra.mxu0 %v251_v43 }
  0x75   : > { %501 = vmatprep.mubr.f32.mxu0 %v254_v45 }
  0x78   : > { %502 = vmatmul.mubr.f32.gmra.mxu0 %v253_v47 }
  0x79   : > { %507 = vmatprep.mubr.f32.mxu0 %v256_v49 }
  0x7c   : > { %508 = vmatmul.mubr.f32.gmra.mxu0 %v255_v51 }
  0x7d   : > { %513 = vmatprep.mubr.f32.mxu0 %v258_v53 }
  0x80   : > { %514 = vmatmul.mubr.f32.gmra.mxu0 %v257_v55 }
  0x81   : > { %519 = vmatprep.mubr.f32.mxu0 %v260_v57 }
  0x84   : > { %520 = vmatmul.mubr.f32.gmra.mxu0 %v259_v58 }
  0x85   : > { %525 = vmatprep.mubr.f32.mxu0 %v262_v59 }
  0x88   : > { %526 = vmatmul.mubr.f32.gmra.mxu0 %v261_v60 }
  0x89   : > { %531 = vmatprep.mubr.f32.mxu0 %v264_v61 }
  0x8c   : > { %532 = vmatmul.mubr.f32.gmra.mxu0 %v263_v62 }
  0x8d   : > { %537 = vmatprep.mubr.f32.mxu0 %v266_v63 }
  0x90   : > { %538 = vmatmul.mubr.f32.gmra.mxu0 %v265_v1 }
  0x91   : > { %543 = vmatprep.mubr.f32.mxu0 %v268_v2 }
  0x94   : > { %544 = vmatmul.mubr.f32.gmra.mxu0 %v267_v6 }
  0x95   : > { %549 = vmatprep.mubr.f32.mxu0 %v270_v7 }
  0x98   : > { %550 = vmatmul.mubr.f32.gmra.mxu0 %v269_v9 }
  0x99   : > { %555 = vmatprep.mubr.f32.mxu0 %v272_v10 }
  0x9c   : > { %556 = vmatmul.mubr.f32.gmra.mxu0 %v271_v11 }
  0x9d   : > { %561 = vmatprep.mubr.f32.mxu0 %v274_v12 }
  0xa0   : > { %562 = vmatmul.mubr.f32.gmra.mxu0 %v273_v3 }
  0xa1   : > { %567 = vmatprep.mubr.f32.mxu0 %v276_v13 }
  0xa4   : > { %568 = vmatmul.mubr.f32.gmra.mxu0 %v275_v14 }
  0xa5   : > { %573 = vmatprep.mubr.f32.mxu0 %v278_v15 }
  0xa8   : > { %574 = vmatmul.mubr.f32.gmra.mxu0 %v277_v16 }
  0xa9   : > { %579 = vmatprep.mubr.f32.mxu0 %v280_v17 }
  0xac   : > { %580 = vmatmul.mubr.f32.gmra.mxu0 %v279_v18 }
  0xad   : > { %585 = vmatprep.mubr.f32.mxu0 %v282_v19 }
  0xb0   : > { %586 = vmatmul.mubr.f32.gmra.mxu0 %v281_v20 }
  0xb1   : > { %591 = vmatprep.mubr.f32.mxu0 %v284_v21 }
  0xb4   : > { %592 = vmatmul.mubr.f32.gmra.mxu0 %v283_v22 }
  0xb5   : > { %597 = vmatprep.mubr.f32.mxu0 %v286_v23 }
  0xb8   : > { %598 = vmatmul.mubr.f32.gmra.mxu0 %v285_v24 }
  0xb9   : > { %603 = vmatprep.mubr.f32.mxu0 %v288_v25 }
  0xbc   : > { %604 = vmatmul.mubr.f32.gmra.mxu0 %v287_v26 }
  0xbd   : > { %609 = vmatprep.mubr.f32.mxu0 %v290_v27 }
  0xc0   : > { %610 = vmatmul.mubr.f32.gmra.mxu0 %v289_v28 }
  0xc1   : > { %615 = vmatprep.mubr.f32.mxu0 %v292_v29 }
  0xc4   : > { %616 = vmatmul.mubr.f32.gmra.mxu0 %v291_v30 }
  0xc5   : > { %621 = vmatprep.mubr.f32.mxu0 %v294_v31 }
  0xc8   : > { %622 = vmatmul.mubr.f32.gmra.mxu0 %v293_v32 }
 0x10c   : > { %v437_v40 = vpop.f32.mrf.mxu0 }
 0x10d   : > { %v438_v41 = vadd.f32 %v437_v40, %v1509_v38 }
 0x10e   : > { %v439_v42 = vpop.f32.mrf.mxu0 }
 0x10f   : > { %v440_v43 = vadd.f32 %v439_v42, %v1511_v39  ;;  %v628_v46 = vmax.f32 %v438_v41, 0.0 }
 0x110   : > { %v443_v44 = vpop.f32.mrf.mxu0 }
 0x111   : > { %v629_v45 = vmax.f32 %v440_v43, 0.0  ;;  %v444_v47 = vadd.f32 %v443_v44, %v1509_v38 }
 0x112   : > { %v445_v48 = vpop.f32.mrf.mxu0 }
 0x113   : > { %v446_v49 = vadd.f32 %v445_v48, %v1511_v39  ;;  %795 = vmatprep.mubr.f32.mxu1 %v629_v45  ;;  %v630_v52 = vmax.f32 %v444_v47, 0.0 }
 0x114   : > { %v449_v50 = vpop.f32.mrf.mxu0  ;;  %796 = vmatmul.mubr.f32.vlgmr.msra.gmra.mxu1 %v628_v46 }
 0x115   : > { %v631_v51 = vmax.f32 %v446_v49, 0.0  ;;  %v450_v53 = vadd.f32 %v449_v50, %v1509_v38 }
 0x116   : > { %v451_v54 = vpop.f32.mrf.mxu0 }
 0x117   : > { %v452_v55 = vadd.f32 %v451_v54, %v1511_v39  ;;  %800 = vmatprep.mubr.f32.mxu1 %v631_v51  ;;  %v632_v58 = vmax.f32 %v450_v53, 0.0 }
 0x118   : > { %v455_v56 = vpop.f32.mrf.mxu0  ;;  %801 = vmatmul.mubr.f32.gmra.mxu1 %v630_v52 }
 0x119   : > { %v633_v57 = vmax.f32 %v452_v55, 0.0  ;;  %v456_v59 = vadd.f32 %v455_v56, %v1509_v38 }
 0x11a   : > { %v457_v60 = vpop.f32.mrf.mxu0 }
 0x11b   : > { %v458_v61 = vadd.f32 %v457_v60, %v1511_v39  ;;  %805 = vmatprep.mubr.f32.mxu1 %v633_v57  ;;  %v634_v0 = vmax.f32 %v456_v59, 0.0 }
 0x11c   : > { %v461_v62 = vpop.f32.mrf.mxu0  ;;  %806 = vmatmul.mubr.f32.gmra.mxu1 %v632_v58 }
 0x11d   : > { %v635_v63 = vmax.f32 %v458_v61, 0.0  ;;  %v462_v1 = vadd.f32 %v461_v62, %v1509_v38 }
 0x11e   : > { %v463_v2 = vpop.f32.mrf.mxu0 }
 0x11f   : > { %v464_v4 = vadd.f32 %v463_v2, %v1511_v39  ;;  %810 = vmatprep.mubr.f32.mxu1 %v635_v63  ;;  %v636_v7 = vmax.f32 %v462_v1, 0.0 }
 0x120   : > { %v467_v5 = vpop.f32.mrf.mxu0  ;;  %811 = vmatmul.mubr.f32.gmra.mxu1 %v634_v0 }
 0x121   : > { %v637_v6 = vmax.f32 %v464_v4, 0.0  ;;  %v468_v8 = vadd.f32 %v467_v5, %v1509_v38 }
 0x122   : > { %v469_v9 = vpop.f32.mrf.mxu0 }
 0x123   : > { %v470_v10 = vadd.f32 %v469_v9, %v1511_v39  ;;  %815 = vmatprep.mubr.f32.mxu1 %v637_v6  ;;  %v638_v3 = vmax.f32 %v468_v8, 0.0 }
 0x124   : > { %v473_v11 = vpop.f32.mrf.mxu0  ;;  %816 = vmatmul.mubr.f32.gmra.mxu1 %v636_v7 }
 0x125   : > { %v639_v12 = vmax.f32 %v470_v10, 0.0  ;;  %v474_v13 = vadd.f32 %v473_v11, %v1509_v38 }
 0x126   : > { %v475_v14 = vpop.f32.mrf.mxu0 }
 0x127   : > { %v476_v15 = vadd.f32 %v475_v14, %v1511_v39  ;;  %820 = vmatprep.mubr.f32.mxu1 %v639_v12  ;;  %v640_v18 = vmax.f32 %v474_v13, 0.0 }
 0x128   : > { %v479_v16 = vpop.f32.mrf.mxu0  ;;  %821 = vmatmul.mubr.f32.gmra.mxu1 %v638_v3 }
 0x129   : > { %v641_v17 = vmax.f32 %v476_v15, 0.0  ;;  %v480_v19 = vadd.f32 %v479_v16, %v1509_v38 }
 0x12a   : > { %v481_v20 = vpop.f32.mrf.mxu0 }
 0x12b   : > { %v482_v21 = vadd.f32 %v481_v20, %v1511_v39  ;;  %825 = vmatprep.mubr.f32.mxu1 %v641_v17  ;;  %v642_v24 = vmax.f32 %v480_v19, 0.0 }
 0x12c   : > { %v485_v22 = vpop.f32.mrf.mxu0  ;;  %826 = vmatmul.mubr.f32.gmra.mxu1 %v640_v18 }
 0x12d   : > { %v643_v23 = vmax.f32 %v482_v21, 0.0  ;;  %v486_v25 = vadd.f32 %v485_v22, %v1509_v38 }
 0x12e   : > { %v487_v26 = vpop.f32.mrf.mxu0 }
 0x12f   : > { %v488_v27 = vadd.f32 %v487_v26, %v1511_v39  ;;  %830 = vmatprep.mubr.f32.mxu1 %v643_v23  ;;  %v644_v30 = vmax.f32 %v486_v25, 0.0 }
 0x130   : > { %v491_v28 = vpop.f32.mrf.mxu0  ;;  %831 = vmatmul.mubr.f32.gmra.mxu1 %v642_v24 }
 0x131   : > { %v645_v29 = vmax.f32 %v488_v27, 0.0  ;;  %v492_v31 = vadd.f32 %v491_v28, %v1509_v38 }
 0x132   : > { %v493_v32 = vpop.f32.mrf.mxu0 }
 0x133   : > { %v494_v33 = vadd.f32 %v493_v32, %v1511_v39  ;;  %835 = vmatprep.mubr.f32.mxu1 %v645_v29  ;;  %v646_v36 = vmax.f32 %v492_v31, 0.0 }
 0x134   : > { %v497_v34 = vpop.f32.mrf.mxu0  ;;  %836 = vmatmul.mubr.f32.gmra.mxu1 %v644_v30 }
 0x135   : > { %v647_v35 = vmax.f32 %v494_v33, 0.0  ;;  %v498_v37 = vadd.f32 %v497_v34, %v1509_v38 }
 0x136   : > { %v499_v40 = vpop.f32.mrf.mxu0 }
 0x137   : > { %v500_v41 = vadd.f32 %v499_v40, %v1511_v39  ;;  %840 = vmatprep.mubr.f32.mxu1 %v647_v35  ;;  %v648_v44 = vmax.f32 %v498_v37, 0.0 }
 0x138   : > { %v503_v42 = vpop.f32.mrf.mxu0  ;;  %841 = vmatmul.mubr.f32.gmra.mxu1 %v646_v36 }
 0x139   : > { %v649_v43 = vmax.f32 %v500_v41, 0.0  ;;  %v504_v45 = vadd.f32 %v503_v42, %v1509_v38 }
 0x13a   : > { %v505_v46 = vpop.f32.mrf.mxu0 }
 0x13b   : > { %v506_v47 = vadd.f32 %v505_v46, %v1511_v39  ;;  %845 = vmatprep.mubr.f32.mxu1 %v649_v43  ;;  %v650_v50 = vmax.f32 %v504_v45, 0.0 }
 0x13c   : > { %v509_v48 = vpop.f32.mrf.mxu0  ;;  %846 = vmatmul.mubr.f32.gmra.mxu1 %v648_v44 }
 0x13d   : > { %v651_v49 = vmax.f32 %v506_v47, 0.0  ;;  %v510_v51 = vadd.f32 %v509_v48, %v1509_v38 }
 0x13e   : > { %v511_v52 = vpop.f32.mrf.mxu0 }
 0x13f   : > { %v512_v53 = vadd.f32 %v511_v52, %v1511_v39  ;;  %850 = vmatprep.mubr.f32.mxu1 %v651_v49  ;;  %v652_v56 = vmax.f32 %v510_v51, 0.0 }
 0x140   : > { %v515_v54 = vpop.f32.mrf.mxu0  ;;  %851 = vmatmul.mubr.f32.gmra.mxu1 %v650_v50 }
 0x141   : > { %v653_v55 = vmax.f32 %v512_v53, 0.0  ;;  %v516_v57 = vadd.f32 %v515_v54, %v1509_v38 }
 0x142   : > { %v517_v58 = vpop.f32.mrf.mxu0 }
 0x143   : > { %v518_v59 = vadd.f32 %v517_v58, %v1511_v39  ;;  %855 = vmatprep.mubr.f32.mxu1 %v653_v55  ;;  %v654_v62 = vmax.f32 %v516_v57, 0.0 }
 0x144   : > { %v521_v60 = vpop.f32.mrf.mxu0  ;;  %856 = vmatmul.mubr.f32.gmra.mxu1 %v652_v56 }
 0x145   : > { %v655_v61 = vmax.f32 %v518_v59, 0.0  ;;  %v522_v63 = vadd.f32 %v521_v60, %v1509_v38 }
 0x146   : > { %v523_v0 = vpop.f32.mrf.mxu0 }
 0x147   : > { %v524_v1 = vadd.f32 %v523_v0, %v1511_v39  ;;  %860 = vmatprep.mubr.f32.mxu1 %v655_v61  ;;  %v656_v5 = vmax.f32 %v522_v63, 0.0 }
 0x148   : > { %v527_v2 = vpop.f32.mrf.mxu0  ;;  %861 = vmatmul.mubr.f32.gmra.mxu1 %v654_v62 }
 0x149   : > { %v657_v4 = vmax.f32 %v524_v1, 0.0  ;;  %v528_v6 = vadd.f32 %v527_v2, %v1509_v38 }
 0x14a   : > { %v529_v7 = vpop.f32.mrf.mxu0 }
 0x14b   : > { %v530_v8 = vadd.f32 %v529_v7, %v1511_v39  ;;  %865 = vmatprep.mubr.f32.mxu1 %v657_v4  ;;  %v658_v11 = vmax.f32 %v528_v6, 0.0 }
 0x14c   : > { %v533_v9 = vpop.f32.mrf.mxu0  ;;  %866 = vmatmul.mubr.f32.gmra.mxu1 %v656_v5 }
 0x14d   : > { %v659_v10 = vmax.f32 %v530_v8, 0.0  ;;  %v534_v12 = vadd.f32 %v533_v9, %v1509_v38 }
 0x14e   : > { %v535_v3 = vpop.f32.mrf.mxu0 }
 0x14f   : > { %v536_v13 = vadd.f32 %v535_v3, %v1511_v39  ;;  %870 = vmatprep.mubr.f32.mxu1 %v659_v10  ;;  %v660_v16 = vmax.f32 %v534_v12, 0.0 }
 0x150   : > { %v539_v14 = vpop.f32.mrf.mxu0  ;;  %871 = vmatmul.mubr.f32.gmra.mxu1 %v658_v11 }
 0x151   : > { %v661_v15 = vmax.f32 %v536_v13, 0.0  ;;  %v540_v17 = vadd.f32 %v539_v14, %v1509_v38 }
 0x152   : > { %v541_v18 = vpop.f32.mrf.mxu0 }
 0x153   : > { %v542_v19 = vadd.f32 %v541_v18, %v1511_v39  ;;  %875 = vmatprep.mubr.f32.mxu1 %v661_v15  ;;  %v662_v22 = vmax.f32 %v540_v17, 0.0 }
 0x154   : > { %v545_v20 = vpop.f32.mrf.mxu0  ;;  %876 = vmatmul.mubr.f32.gmra.mxu1 %v660_v16 }
 0x155   : > { %v663_v21 = vmax.f32 %v542_v19, 0.0  ;;  %v546_v23 = vadd.f32 %v545_v20, %v1509_v38 }
 0x156   : > { %v547_v24 = vpop.f32.mrf.mxu0 }
 0x157   : > { %v548_v25 = vadd.f32 %v547_v24, %v1511_v39  ;;  %880 = vmatprep.mubr.f32.mxu1 %v663_v21  ;;  %v664_v28 = vmax.f32 %v546_v23, 0.0 }
 0x158   : > { %v551_v26 = vpop.f32.mrf.mxu0  ;;  %881 = vmatmul.mubr.f32.gmra.mxu1 %v662_v22 }
 0x159   : > { %v665_v27 = vmax.f32 %v548_v25, 0.0  ;;  %v552_v29 = vadd.f32 %v551_v26, %v1509_v38 }
 0x15a   : > { %v553_v30 = vpop.f32.mrf.mxu0 }
 0x15b   : > { %v554_v31 = vadd.f32 %v553_v30, %v1511_v39  ;;  %885 = vmatprep.mubr.f32.mxu1 %v665_v27  ;;  %v666_v34 = vmax.f32 %v552_v29, 0.0 }
 0x15c   : > { %v557_v32 = vpop.f32.mrf.mxu0  ;;  %886 = vmatmul.mubr.f32.gmra.mxu1 %v664_v28 }
 0x15d   : > { %v667_v33 = vmax.f32 %v554_v31, 0.0  ;;  %v558_v35 = vadd.f32 %v557_v32, %v1509_v38 }
 0x15e   : > { %v559_v36 = vpop.f32.mrf.mxu0 }
 0x15f   : > { %v560_v37 = vadd.f32 %v559_v36, %v1511_v39  ;;  %890 = vmatprep.mubr.f32.mxu1 %v667_v33  ;;  %v668_v42 = vmax.f32 %v558_v35, 0.0 }
 0x160   : > { %v563_v40 = vpop.f32.mrf.mxu0  ;;  %891 = vmatmul.mubr.f32.gmra.mxu1 %v666_v34 }
 0x161   : > { %v669_v41 = vmax.f32 %v560_v37, 0.0  ;;  %v564_v43 = vadd.f32 %v563_v40, %v1509_v38 }
 0x162   : > { %v565_v44 = vpop.f32.mrf.mxu0 }
 0x163   : > { %v566_v45 = vadd.f32 %v565_v44, %v1511_v39  ;;  %895 = vmatprep.mubr.f32.mxu1 %v669_v41  ;;  %v670_v48 = vmax.f32 %v564_v43, 0.0 }
 0x164   : > { %v569_v46 = vpop.f32.mrf.mxu0  ;;  %896 = vmatmul.mubr.f32.gmra.mxu1 %v668_v42 }
 0x165   : > { %v671_v47 = vmax.f32 %v566_v45, 0.0  ;;  %v570_v49 = vadd.f32 %v569_v46, %v1509_v38  ;;  %v1581_v46 = vld [vmem:[%s1659_s4] ss:$0 sm:$0xff] }
 0x166   : > { %v571_v50 = vpop.f32.mrf.mxu0 }
 0x167   : > { %v572_v51 = vadd.f32 %v571_v50, %v1511_v39  ;;  %900 = vmatprep.mubr.f32.mxu1 %v671_v47  ;;  %v672_v54 = vmax.f32 %v570_v49, 0.0 }
 0x168   : > { %v575_v52 = vpop.f32.mrf.mxu0  ;;  %901 = vmatmul.mubr.f32.gmra.mxu1 %v670_v48 }
 0x169   : > { %v673_v53 = vmax.f32 %v572_v51, 0.0  ;;  %v576_v55 = vadd.f32 %v575_v52, %v1509_v38 }
 0x16a   : > { %v577_v56 = vpop.f32.mrf.mxu0 }
 0x16b   : > { %v578_v57 = vadd.f32 %v577_v56, %v1511_v39  ;;  %905 = vmatprep.mubr.f32.mxu1 %v673_v53  ;;  %v674_v60 = vmax.f32 %v576_v55, 0.0 }
 0x16c   : > { %v581_v58 = vpop.f32.mrf.mxu0  ;;  %906 = vmatmul.mubr.f32.gmra.mxu1 %v672_v54 }
 0x16d   : > { %v675_v59 = vmax.f32 %v578_v57, 0.0  ;;  %v582_v61 = vadd.f32 %v581_v58, %v1509_v38 }
 0x16e   : > { %v583_v62 = vpop.f32.mrf.mxu0 }
 0x16f   : > { %v584_v63 = vadd.f32 %v583_v62, %v1511_v39  ;;  %910 = vmatprep.mubr.f32.mxu1 %v675_v59  ;;  %v676_v2 = vmax.f32 %v582_v61, 0.0 }
 0x170   : > { %v587_v0 = vpop.f32.mrf.mxu0  ;;  %911 = vmatmul.mubr.f32.gmra.mxu1 %v674_v60 }
 0x171   : > { %v677_v1 = vmax.f32 %v584_v63, 0.0  ;;  %v588_v4 = vadd.f32 %v587_v0, %v1509_v38 }
 0x172   : > { %v589_v5 = vpop.f32.mrf.mxu0 }
 0x173   : > { %v590_v6 = vadd.f32 %v589_v5, %v1511_v39  ;;  %915 = vmatprep.mubr.f32.mxu1 %v677_v1  ;;  %v678_v9 = vmax.f32 %v588_v4, 0.0 }
 0x174   : > { %v593_v7 = vpop.f32.mrf.mxu0  ;;  %916 = vmatmul.mubr.f32.gmra.mxu1 %v676_v2 }
 0x175   : > { %v679_v8 = vmax.f32 %v590_v6, 0.0  ;;  %v594_v10 = vadd.f32 %v593_v7, %v1509_v38 }
 0x176   : > { %v595_v11 = vpop.f32.mrf.mxu0 }
 0x177   : > { %v596_v12 = vadd.f32 %v595_v11, %v1511_v39  ;;  %920 = vmatprep.mubr.f32.mxu1 %v679_v8  ;;  %v680_v14 = vmax.f32 %v594_v10, 0.0 }
 0x178   : > { %v599_v3 = vpop.f32.mrf.mxu0  ;;  %921 = vmatmul.mubr.f32.gmra.mxu1 %v678_v9 }
 0x179   : > { %v681_v13 = vmax.f32 %v596_v12, 0.0  ;;  %v600_v15 = vadd.f32 %v599_v3, %v1509_v38 }
 0x17a   : > { %v601_v16 = vpop.f32.mrf.mxu0 }
 0x17b   : > { %v602_v17 = vadd.f32 %v601_v16, %v1511_v39  ;;  %925 = vmatprep.mubr.f32.mxu1 %v681_v13  ;;  %v682_v20 = vmax.f32 %v600_v15, 0.0 }
 0x17c   : > { %v605_v18 = vpop.f32.mrf.mxu0  ;;  %926 = vmatmul.mubr.f32.gmra.mxu1 %v680_v14 }
 0x17d   : > { %v683_v19 = vmax.f32 %v602_v17, 0.0  ;;  %v606_v21 = vadd.f32 %v605_v18, %v1509_v38 }
 0x17e   : > { %v607_v22 = vpop.f32.mrf.mxu0 }
 0x17f   : > { %v608_v23 = vadd.f32 %v607_v22, %v1511_v39  ;;  %930 = vmatprep.mubr.f32.mxu1 %v683_v19  ;;  %v684_v26 = vmax.f32 %v606_v21, 0.0 }
 0x180   : > { %v611_v24 = vpop.f32.mrf.mxu0  ;;  %931 = vmatmul.mubr.f32.gmra.mxu1 %v682_v20 }
 0x181   : > { %v685_v25 = vmax.f32 %v608_v23, 0.0  ;;  %v612_v27 = vadd.f32 %v611_v24, %v1509_v38 }
 0x182   : > { %v613_v28 = vpop.f32.mrf.mxu0 }
 0x183   : > { %v614_v29 = vadd.f32 %v613_v28, %v1511_v39  ;;  %935 = vmatprep.mubr.f32.mxu1 %v685_v25  ;;  %v686_v32 = vmax.f32 %v612_v27, 0.0 }
 0x184   : > { %v617_v30 = vpop.f32.mrf.mxu0  ;;  %936 = vmatmul.mubr.f32.gmra.mxu1 %v684_v26 }
 0x185   : > { %v687_v31 = vmax.f32 %v614_v29, 0.0  ;;  %v618_v33 = vadd.f32 %v617_v30, %v1509_v38 }
 0x186   : > { %v619_v34 = vpop.f32.mrf.mxu0 }
 0x187   : > { %v620_v35 = vadd.f32 %v619_v34, %v1511_v39  ;;  %940 = vmatprep.mubr.f32.mxu1 %v687_v31  ;;  %v688_v40 = vmax.f32 %v618_v33, 0.0 }
 0x188   : > { %v623_v36 = vpop.f32.mrf.mxu0  ;;  %941 = vmatmul.mubr.f32.gmra.mxu1 %v686_v32 }
 0x189   : > { %v689_v37 = vmax.f32 %v620_v35, 0.0  ;;  %v624_v41 = vadd.f32 %v623_v36, %v1509_v38 }
 0x18a   : > { %v625_v42 = vpop.f32.mrf.mxu0 }
 0x18b   : > { %v626_v43 = vadd.f32 %v625_v42, %v1511_v39  ;;  %945 = vmatprep.mubr.f32.mxu1 %v689_v37  ;;  %v690_v45 = vmax.f32 %v624_v41, 0.0 }
 0x18c   : > { %946 = vmatmul.mubr.f32.gmra.mxu1 %v688_v40 }
 0x18d   : > { %v691_v44 = vmax.f32 %v626_v43, 0.0 }
 0x18f   : > { %950 = vmatprep.mubr.f32.mxu1 %v691_v44 }
 0x190   : > { %951 = vmatmul.mubr.f32.gmra.mxu1 %v690_v45 }
 0x1d4   : > { %v797_v38 = vpop.f32.mrf.mxu1 }
 0x1d5   : > { %v798_v39 = vadd.f32 %v1581_v46, %v797_v38 }
 0x1d6   : > { %v799_v47 = vpop.f32.mrf.mxu1 }
 0x1d7   : > { %956 = vst [vmem:[%s1586_s22] sm:$0xff] %v798_v39 }
 0x1d8   : > { %v802_v48 = vpop.f32.mrf.mxu1 }
 0x1d9   : > { %v803_v49 = vadd.f32 %v1581_v46, %v802_v48 }
 0x1da   : > { %v804_v50 = vpop.f32.mrf.mxu1 }
 0x1db   : > { %957 = vst [vmem:[%s1586_s22 + $0x8] sm:$0xff] %v803_v49 }
 0x1dc   : > { %v807_v51 = vpop.f32.mrf.mxu1 }
 0x1dd   : > { %v808_v52 = vadd.f32 %v1581_v46, %v807_v51 }
 0x1de   : > { %v809_v53 = vpop.f32.mrf.mxu1 }
 0x1df   : > { %958 = vst [vmem:[%s1586_s22 + $0x10] sm:$0xff] %v808_v52 }
 0x1e0   : > { %v812_v54 = vpop.f32.mrf.mxu1 }
 0x1e1   : > { %v813_v55 = vadd.f32 %v1581_v46, %v812_v54 }
 0x1e2   : > { %v814_v56 = vpop.f32.mrf.mxu1 }
 0x1e3   : > { %959 = vst [vmem:[%s1586_s22 + $0x18] sm:$0xff] %v813_v55 }
 0x1e4   : > { %v817_v57 = vpop.f32.mrf.mxu1 }
 0x1e5   : > { %v818_v58 = vadd.f32 %v1581_v46, %v817_v57 }
 0x1e6   : > { %v819_v59 = vpop.f32.mrf.mxu1 }
 0x1e7   : > { %960 = vst [vmem:[%s1586_s22 + $0x20] sm:$0xff] %v818_v58 }
 0x1e8   : > { %v822_v60 = vpop.f32.mrf.mxu1 }
 0x1e9   : > { %v823_v61 = vadd.f32 %v1581_v46, %v822_v60 }
 0x1ea   : > { %v824_v62 = vpop.f32.mrf.mxu1 }
 0x1eb   : > { %961 = vst [vmem:[%s1586_s22 + $0x28] sm:$0xff] %v823_v61 }
 0x1ec   : > { %v827_v63 = vpop.f32.mrf.mxu1 }
 0x1ed   : > { %v828_v0 = vadd.f32 %v1581_v46, %v827_v63 }
 0x1ee   : > { %v829_v1 = vpop.f32.mrf.mxu1 }
 0x1ef   : > { %962 = vst [vmem:[%s1586_s22 + $0x30] sm:$0xff] %v828_v0 }
 0x1f0   : > { %v832_v2 = vpop.f32.mrf.mxu1 }
 0x1f1   : > { %v833_v4 = vadd.f32 %v1581_v46, %v832_v2 }
 0x1f2   : > { %v834_v5 = vpop.f32.mrf.mxu1 }
 0x1f3   : > { %963 = vst [vmem:[%s1586_s22 + $0x38] sm:$0xff] %v833_v4 }
 0x1f4   : > { %v837_v6 = vpop.f32.mrf.mxu1 }
 0x1f5   : > { %v838_v7 = vadd.f32 %v1581_v46, %v837_v6 }
 0x1f6   : > { %v839_v8 = vpop.f32.mrf.mxu1 }
 0x1f7   : > { %964 = vst [vmem:[%s1586_s22 + $0x40] sm:$0xff] %v838_v7 }
 0x1f8   : > { %v842_v9 = vpop.f32.mrf.mxu1 }
 0x1f9   : > { %v843_v10 = vadd.f32 %v1581_v46, %v842_v9 }
 0x1fa   : > { %v844_v11 = vpop.f32.mrf.mxu1 }
 0x1fb   : > { %965 = vst [vmem:[%s1586_s22 + $0x48] sm:$0xff] %v843_v10 }
 0x1fc   : > { %v847_v12 = vpop.f32.mrf.mxu1 }
 0x1fd   : > { %v848_v3 = vadd.f32 %v1581_v46, %v847_v12 }
 0x1fe   : > { %v849_v13 = vpop.f32.mrf.mxu1 }
 0x1ff   : > { %966 = vst [vmem:[%s1586_s22 + $0x50] sm:$0xff] %v848_v3 }
 0x200   : > { %v852_v14 = vpop.f32.mrf.mxu1 }
 0x201   : > { %v853_v15 = vadd.f32 %v1581_v46, %v852_v14 }
 0x202   : > { %v854_v16 = vpop.f32.mrf.mxu1 }
 0x203   : > { %967 = vst [vmem:[%s1586_s22 + $0x58] sm:$0xff] %v853_v15 }
 0x204   : > { %v857_v17 = vpop.f32.mrf.mxu1 }
 0x205   : > { %v858_v18 = vadd.f32 %v1581_v46, %v857_v17 }
 0x206   : > { %v859_v19 = vpop.f32.mrf.mxu1 }
 0x207   : > { %968 = vst [vmem:[%s1586_s22 + $0x60] sm:$0xff] %v858_v18 }
 0x208   : > { %v862_v20 = vpop.f32.mrf.mxu1 }
 0x209   : > { %v863_v21 = vadd.f32 %v1581_v46, %v862_v20 }
 0x20a   : > { %v864_v22 = vpop.f32.mrf.mxu1 }
 0x20b   : > { %969 = vst [vmem:[%s1586_s22 + $0x68] sm:$0xff] %v863_v21 }
 0x20c   : > { %v867_v23 = vpop.f32.mrf.mxu1 }
 0x20d   : > { %v868_v24 = vadd.f32 %v1581_v46, %v867_v23 }
 0x20e   : > { %v869_v25 = vpop.f32.mrf.mxu1 }
 0x20f   : > { %970 = vst [vmem:[%s1586_s22 + $0x70] sm:$0xff] %v868_v24 }
 0x210   : > { %v872_v26 = vpop.f32.mrf.mxu1 }
 0x211   : > { %v873_v27 = vadd.f32 %v1581_v46, %v872_v26 }
 0x212   : > { %v874_v28 = vpop.f32.mrf.mxu1 }
 0x213   : > { %971 = vst [vmem:[%s1586_s22 + $0x78] sm:$0xff] %v873_v27 }
 0x214   : > { %v877_v29 = vpop.f32.mrf.mxu1 }
 0x215   : > { %v878_v30 = vadd.f32 %v1581_v46, %v877_v29 }
 0x216   : > { %v879_v31 = vpop.f32.mrf.mxu1 }
 0x217   : > { %972 = vst [vmem:[%s1586_s22 + $0x80] sm:$0xff] %v878_v30 }
 0x218   : > { %v882_v32 = vpop.f32.mrf.mxu1 }
 0x219   : > { %v883_v33 = vadd.f32 %v1581_v46, %v882_v32 }
 0x21a   : > { %v884_v34 = vpop.f32.mrf.mxu1 }
 0x21b   : > { %973 = vst [vmem:[%s1586_s22 + $0x88] sm:$0xff] %v883_v33 }
 0x21c   : > { %v887_v35 = vpop.f32.mrf.mxu1 }
 0x21d   : > { %v888_v36 = vadd.f32 %v1581_v46, %v887_v35 }
 0x21e   : > { %v889_v37 = vpop.f32.mrf.mxu1 }
 0x21f   : > { %974 = vst [vmem:[%s1586_s22 + $0x90] sm:$0xff] %v888_v36 }
 0x220   : > { %v892_v40 = vpop.f32.mrf.mxu1 }
 0x221   : > { %v893_v41 = vadd.f32 %v1581_v46, %v892_v40 }
 0x222   : > { %v894_v42 = vpop.f32.mrf.mxu1 }
 0x223   : > { %975 = vst [vmem:[%s1586_s22 + $0x98] sm:$0xff] %v893_v41 }
 0x224   : > { %v897_v43 = vpop.f32.mrf.mxu1 }
 0x225   : > { %v898_v44 = vadd.f32 %v1581_v46, %v897_v43 }
 0x226   : > { %v899_v45 = vpop.f32.mrf.mxu1 }
 0x227   : > { %976 = vst [vmem:[%s1586_s22 + $0xa0] sm:$0xff] %v898_v44 }
 0x228   : > { %v902_v38 = vpop.f32.mrf.mxu1 }
 0x229   : > { %v903_v39 = vadd.f32 %v1581_v46, %v902_v38 }
 0x22a   : > { %v904_v47 = vpop.f32.mrf.mxu1 }
 0x22b   : > { %977 = vst [vmem:[%s1586_s22 + $0xa8] sm:$0xff] %v903_v39 }
 0x22c   : > { %v907_v48 = vpop.f32.mrf.mxu1 }
 0x22d   : > { %v908_v49 = vadd.f32 %v1581_v46, %v907_v48 }
 0x22e   : > { %v909_v50 = vpop.f32.mrf.mxu1 }
 0x22f   : > { %978 = vst [vmem:[%s1586_s22 + $0xb0] sm:$0xff] %v908_v49 }
 0x230   : > { %v912_v51 = vpop.f32.mrf.mxu1 }
 0x231   : > { %v913_v52 = vadd.f32 %v1581_v46, %v912_v51 }
 0x232   : > { %v914_v53 = vpop.f32.mrf.mxu1 }
 0x233   : > { %979 = vst [vmem:[%s1586_s22 + $0xb8] sm:$0xff] %v913_v52 }
 0x234   : > { %v917_v54 = vpop.f32.mrf.mxu1 }
 0x235   : > { %v918_v55 = vadd.f32 %v1581_v46, %v917_v54 }
 0x236   : > { %v919_v56 = vpop.f32.mrf.mxu1 }
 0x237   : > { %980 = vst [vmem:[%s1586_s22 + $0xc0] sm:$0xff] %v918_v55 }
 0x238   : > { %v922_v57 = vpop.f32.mrf.mxu1 }
 0x239   : > { %v923_v58 = vadd.f32 %v1581_v46, %v922_v57 }
 0x23a   : > { %v924_v59 = vpop.f32.mrf.mxu1 }
 0x23b   : > { %981 = vst [vmem:[%s1586_s22 + $0xc8] sm:$0xff] %v923_v58 }
 0x23c   : > { %v927_v60 = vpop.f32.mrf.mxu1 }
 0x23d   : > { %v928_v61 = vadd.f32 %v1581_v46, %v927_v60 }
 0x23e   : > { %v929_v62 = vpop.f32.mrf.mxu1 }
 0x23f   : > { %982 = vst [vmem:[%s1586_s22 + $0xd0] sm:$0xff] %v928_v61 }
 0x240   : > { %v932_v63 = vpop.f32.mrf.mxu1 }
 0x241   : > { %v933_v0 = vadd.f32 %v1581_v46, %v932_v63 }
 0x242   : > { %v934_v1 = vpop.f32.mrf.mxu1 }
 0x243   : > { %983 = vst [vmem:[%s1586_s22 + $0xd8] sm:$0xff] %v933_v0 }
 0x244   : > { %v937_v2 = vpop.f32.mrf.mxu1 }
 0x245   : > { %v938_v4 = vadd.f32 %v1581_v46, %v937_v2 }
 0x246   : > { %v939_v5 = vpop.f32.mrf.mxu1 }
 0x247   : > { %984 = vst [vmem:[%s1586_s22 + $0xe0] sm:$0xff] %v938_v4 }
 0x248   : > { %v942_v6 = vpop.f32.mrf.mxu1 }
 0x249   : > { %v943_v7 = vadd.f32 %v1581_v46, %v942_v6 }
 0x24a   : > { %v944_v8 = vpop.f32.mrf.mxu1 }
 0x24b   : > { %985 = vst [vmem:[%s1586_s22 + $0xe8] sm:$0xff] %v943_v7 }
 0x24c   : > { %v947_v9 = vpop.f32.mrf.mxu1 }
 0x24d   : > { %v948_v10 = vadd.f32 %v1581_v46, %v947_v9 }
 0x24e   : > { %v949_v11 = vpop.f32.mrf.mxu1 }
 0x24f   : > { %986 = vst [vmem:[%s1586_s22 + $0xf0] sm:$0xff] %v948_v10 }
 0x250   : > { %v952_v12 = vpop.f32.mrf.mxu1 }
 0x251   : > { %v953_v3 = vadd.f32 %v1581_v46, %v952_v12 }
 0x252   : > { %v954_v13 = vpop.f32.mrf.mxu1 }
 0x253   : > { %987 = vst [vmem:[%s1586_s22 + $0xf8] sm:$0xff] %v953_v3 }
 0x254 PF: > { %s15_s18 = sadd.s32 1, %s1073_s18  }
 0x255   : > { %p12_p4 = scmp.ge.s32.totalorder %s15_s18, 4  }
 0x257   :  { %14 = sbr.rel (!%p12_p4) target bundleno = 1 (0x1), region = 70 }

</bundles_post_ra>
